<compile_context>
chip_gen: v5e
topology: v5e:2x2
jax: 0.10.0
libtpu: 0.0.40
codegen_flags: <defaults>
</compile_context>

<pallas_src>
import functools

import jax
import jax.numpy as jnp
from jax.experimental import pallas as pl
from jax.experimental.pallas import tpu as pltpu


def _channel_attention_kernel(x_ref, w1t_ref, w2t_ref, o_ref, sum_acc, max_acc,
                              *, nb, inv_spatial, spatial, tile_s, needs_mask):
    # x_ref   : (1, NB, C, TILE_S) current spatial tile of NB batch elements
    # w1t_ref : (C, Cr)   fc1 weight, pre-transposed (Conv2d(C, Cr, 1, bias=False))
    # w2t_ref : (Cr, C)   fc2 weight, pre-transposed (Conv2d(Cr, C, 1, bias=False))
    # o_ref   : (1, NB, C) sigmoid(fc2(relu(fc1(avg))) + fc2(relu(fc1(max))))
    # sum_acc, max_acc : (NB, C, 1) f32 accumulators, persistent across the k axis.
    k = pl.program_id(1)

    @pl.when(k == 0)
    def _init():
        sum_acc[...] = jnp.zeros_like(sum_acc)
        max_acc[...] = jnp.full_like(max_acc, -jnp.inf)

    x = x_ref[0].astype(jnp.float32)                      # (NB, C, TILE_S)
    if needs_mask:
        # cdiv grid: the last tile overhangs S -> mask the tail lanes.
        lane = jax.lax.broadcasted_iota(jnp.int32, x.shape, 2)
        valid = spatial - k * tile_s
        m = lane < valid
        x_sum = jnp.where(m, x, 0.0)
        x_max = jnp.where(m, x, -jnp.inf)
    else:
        x_sum = x
        x_max = x

    sum_acc[...] += jnp.sum(x_sum, axis=-1, keepdims=True)
    max_acc[...] = jnp.maximum(max_acc[...],
                               jnp.max(x_max, axis=-1, keepdims=True))

    @pl.when(k == pl.num_programs(1) - 1)
    def _finalize():
        avg = jnp.sum(sum_acc[...], axis=-1) * inv_spatial     # (NB, C) lane-dense
        mx = jnp.max(max_acc[...], axis=-1)                    # (NB, C)
        pooled = jnp.concatenate([avg, mx], axis=0)            # (2*NB, C)
        w1t = w1t_ref[...].astype(jnp.float32)                 # (C, Cr)
        w2t = w2t_ref[...].astype(jnp.float32)                 # (Cr, C)
        h = jnp.maximum(
            jnp.dot(pooled, w1t, preferred_element_type=jnp.float32), 0.0)
        y = jnp.dot(h, w2t, preferred_element_type=jnp.float32)  # (2*NB, C)
        out = jax.nn.sigmoid(y[:nb] + y[nb:])                    # (NB, C)
        o_ref[0] = out.astype(o_ref.dtype)


def _vmem_capacity_bytes():
    """Per-core VMEM capacity (generation-aware), conservative fallback = v7x."""
    try:
        cap = getattr(pltpu.get_tpu_info(), "vmem_capacity_bytes", None)
        if cap:
            return int(cap)
    except Exception:
        pass
    return 64 * 1024 * 1024


def _choose_spatial_tile(S, C, itemsize, max_tile_bytes):
    """Spatial tile: full-extent when the whole (C, S) plane fits the per-buffer
    budget (or S <= 128); otherwise the largest balanced multiple of 128 within
    the budget (a cdiv grid + in-kernel tail mask covers any remainder)."""
    full_bytes = C * S * itemsize
    if S <= 128 or full_bytes <= max_tile_bytes:
        return S
    bytes_per_lane = max(1, C * itemsize)
    max_groups = max(1, (max_tile_bytes // bytes_per_lane) // 128)
    total_groups = pl.cdiv(S, 128)
    avail = min(S // 128, max_groups)          # tile stays <= S and 128-aligned
    num_k = pl.cdiv(total_groups, avail)
    groups = min(avail, pl.cdiv(total_groups, num_k))
    return groups * 128


def _choose_batch_fold(N, per_batch_block_bytes, max_tile_bytes):
    """Fold several batch elements per block (NB | N) while blocks are small, to
    amortize per-grid-step overhead without hurting the VMEM budget."""
    fold_budget = min(max_tile_bytes, 4 * 1024 * 1024)
    nb = 1
    for d in range(1, N + 1):
        if N % d == 0 and d * per_batch_block_bytes <= fold_budget:
            nb = d
    return nb


def channel_attention(x_nchw, w_fc1, w_fc2, *, max_tile_bytes=None):
    """x_nchw: (N, C, H, W); w_fc1: (Cr, C, 1, 1); w_fc2: (C, Cr, 1, 1).
    Returns (N, C, 1, 1), matching the PyTorch module."""
    N, C, H, W = x_nchw.shape
    Cr = w_fc1.shape[0]
    S = H * W
    itemsize = jnp.dtype(x_nchw.dtype).itemsize
    w_itemsize = jnp.dtype(w_fc1.dtype).itemsize

    vmem_budget = _vmem_capacity_bytes()
    if max_tile_bytes is None:
        # ~16 MiB per buffer on v7x (64 MiB VMEM), ~24 MiB on v5e/v6e (128 MiB).
        max_tile_bytes = min(24 * 1024 * 1024, vmem_budget // 4)

    tile_s = _choose_spatial_tile(S, C, itemsize, max_tile_bytes)
    num_k = pl.cdiv(S, tile_s)
    needs_mask = (S % tile_s) != 0

    nb = _choose_batch_fold(N, C * tile_s * itemsize, max_tile_bytes)
    g = N // nb

    # TODO(synk): when N == 1 on v7x, split the spatial stream across the two
    # TensorCores (per-core partial sum/max accumulators + a tiny combine) so
    # the second core is not idle.

    x4 = x_nchw.reshape(g, nb, C, S)
    w1t = w_fc1.reshape(Cr, C).T        # (C, Cr)
    w2t = w_fc2.reshape(C, Cr).T        # (Cr, C)

    def _pad(a, m):
        return (a + m - 1) // m * m

    # VMEM limit from the real (padded, double-buffered) footprint + slack.
    x_block_bytes = nb * C * tile_s * itemsize
    w_block_bytes = (_pad(C, 8) * _pad(Cr, 128)
                     + _pad(Cr, 8) * _pad(C, 128)) * w_itemsize
    out_block_bytes = _pad(nb, 8) * _pad(C, 128) * itemsize
    scratch_bytes = 2 * nb * _pad(C, 8) * 128 * 4
    footprint = (2 * x_block_bytes + 2 * w_block_bytes + 2 * out_block_bytes
                 + scratch_bytes)
    vmem_limit = int(min(vmem_budget,
                         max(footprint + 8 * 1024 * 1024, 32 * 1024 * 1024)))

    cost = pl.CostEstimate(
        flops=2 * N * C * S + 8 * N * C * Cr + N * C,    # pooling + tiny MLP
        transcendentals=N * C,                            # sigmoid
        bytes_accessed=(N * C * S * itemsize              # stream x once
                        + 2 * C * Cr * w_itemsize         # weights
                        + N * C * itemsize),              # output
    )

    kernel = functools.partial(
        _channel_attention_kernel,
        nb=nb, inv_spatial=1.0 / float(S), spatial=S, tile_s=tile_s,
        needs_mask=needs_mask)

    out = pl.pallas_call(
        kernel,
        out_shape=jax.ShapeDtypeStruct((g, nb, C), x_nchw.dtype),
        grid_spec=pltpu.PrefetchScalarGridSpec(
            num_scalar_prefetch=0,
            grid=(g, num_k),
            in_specs=[
                # Streamed input tile: NB batch elements, full C, tile_s lanes.
                pl.BlockSpec((1, nb, C, tile_s), lambda n, k: (n, 0, 0, k)),
                # Weights: constant block index -> resident, no re-DMA.
                pl.BlockSpec((C, Cr), lambda n, k: (0, 0)),
                pl.BlockSpec((Cr, C), lambda n, k: (0, 0)),
            ],
            # Lane-dense output block (C on lanes), written once at last k.
            out_specs=pl.BlockSpec((1, nb, C), lambda n, k: (n, 0, 0)),
            scratch_shapes=[
                pltpu.VMEM((nb, C, 1), jnp.float32),   # running sum
                pltpu.VMEM((nb, C, 1), jnp.float32),   # running max
            ],
        ),
        compiler_params=pltpu.CompilerParams(
            dimension_semantics=("parallel", "arbitrary"),
            vmem_limit_bytes=vmem_limit,
        ),
        cost_estimate=cost,
    )(x4, w1t, w2t)

    return out.reshape(N, C, 1, 1)


def channel_attention_ref(x_nchw, w_fc1, w_fc2):
    """Pure-JAX reference mirroring the PyTorch module."""
    N, C, H, W = x_nchw.shape
    Cr = w_fc1.shape[0]
    w1 = w_fc1.reshape(Cr, C)
    w2 = w_fc2.reshape(C, Cr)
    avg = jnp.mean(x_nchw, axis=(2, 3))
    mx = jnp.max(x_nchw, axis=(2, 3))

    def mlp(v):
        return jnp.maximum(v @ w1.T, 0.0) @ w2.T

    return jax.nn.sigmoid(mlp(avg) + mlp(mx)).reshape(N, C, 1, 1)


if __name__ == "__main__":
    key = jax.random.PRNGKey(0)
    kx, k1, k2, kx2, k3, k4 = jax.random.split(key, 6)

    # Test 1: module-consistent small shapes (in_planes=64, ratio=16 -> Cr=4).
    N, C, H, W = 2, 64, 16, 16
    Cr = C // 16
    x = jax.random.normal(kx, (N, C, H, W), dtype=jnp.float32)
    w_fc1 = 0.1 * jax.random.normal(k1, (Cr, C, 1, 1), dtype=jnp.float32)
    w_fc2 = 0.1 * jax.random.normal(k2, (C, Cr, 1, 1), dtype=jnp.float32)

    out = jax.block_until_ready(channel_attention(x, w_fc1, w_fc2))
    ref = channel_attention_ref(x, w_fc1, w_fc2)
    assert out.shape == (N, C, 1, 1)
    assert jnp.allclose(out, ref, atol=1e-5, rtol=1e-5)

    # Test 2: non-128-aligned spatial size with a tiny tile budget to force the
    # cdiv grid + tail-mask path and multi-step accumulation.
    N2, C2, H2, W2 = 1, 32, 13, 13
    Cr2 = C2 // 8
    x2 = jax.random.normal(kx2, (N2, C2, H2, W2), dtype=jnp.float32)
    w1b = 0.1 * jax.random.normal(k3, (Cr2, C2, 1, 1), dtype=jnp.float32)
    w2b = 0.1 * jax.random.normal(k4, (C2, Cr2, 1, 1), dtype=jnp.float32)
    out2 = jax.block_until_ready(
        channel_attention(x2, w1b, w2b, max_tile_bytes=16 * 1024))
    ref2 = channel_attention_ref(x2, w1b, w2b)
    assert out2.shape == (N2, C2, 1, 1)
    assert jnp.allclose(out2, ref2, atol=1e-5, rtol=1e-5)

    print("KERNEL_OK")
</pallas_src>

<mosaic_0001>
module attributes {stable_mosaic.version = 11 : i64} {
  func.func @_channel_attention_kernel(%arg0: i32, %arg1: i32, %arg2: memref<1x2x64x256xf32, #tpu.memory_space<vmem>>, %arg3: memref<64x4xf32, #tpu.memory_space<vmem>>, %arg4: memref<4x64xf32, #tpu.memory_space<vmem>>, %arg5: memref<1x2x64xf32, #tpu.memory_space<vmem>>, %arg6: memref<2x64x1xf32, #tpu.memory_space<vmem>>, %arg7: memref<2x64x1xf32, #tpu.memory_space<vmem>>) attributes {dimension_semantics = [#tpu.dimension_semantics<parallel>, #tpu.dimension_semantics<arbitrary>], iteration_bounds = array<i64: 1, 1>, scalar_prefetch = 0 : i64, scratch_operands = 2 : i64, tpu.core_type = #tpu.core_type<tc>, window_params = [{transform_indices = @transform_0, window_bounds = array<i64: 1, 2, 64, 256>}, {pipeline_mode = #tpu.pipeline_mode<synchronous>, transform_indices = @transform_1, window_bounds = array<i64: 64, 4>}, {pipeline_mode = #tpu.pipeline_mode<synchronous>, transform_indices = @transform_2, window_bounds = array<i64: 4, 64>}, {transform_indices = @transform_3, window_bounds = array<i64: 1, 2, 64>}]} {
    %c0_i32 = arith.constant 0 : i32
    %0 = arith.cmpi eq, %arg1, %c0_i32 : i32
    %1 = arith.extui %0 : i1 to i32
    %c0_i32_0 = arith.constant 0 : i32
    %2 = arith.cmpi ne, %1, %c0_i32_0 : i32
    scf.if %2 {
      %cst_19 = arith.constant 0.000000e+00 : f32
      %18 = vector.broadcast %cst_19 : f32 to vector<2x64x1xf32>
      %c0_20 = arith.constant 0 : index
      %c0_21 = arith.constant 0 : index
      %c0_22 = arith.constant 0 : index
      %19 = vector.load %arg6[%c0_20, %c0_21, %c0_22] : memref<2x64x1xf32, #tpu.memory_space<vmem>>, vector<2x64x1xf32>
      tpu.vector_store %arg6[%c0_20, %c0_21, %c0_22], %18 {strides = array<i32>} : memref<2x64x1xf32, #tpu.memory_space<vmem>>, vector<2x64x1xf32>,
      %cst_23 = arith.constant 0xFF800000 : f32
      %20 = vector.broadcast %cst_23 : f32 to vector<2x64x1xf32>
      %c0_24 = arith.constant 0 : index
      %c0_25 = arith.constant 0 : index
      %c0_26 = arith.constant 0 : index
      %21 = vector.load %arg7[%c0_24, %c0_25, %c0_26] : memref<2x64x1xf32, #tpu.memory_space<vmem>>, vector<2x64x1xf32>
      tpu.vector_store %arg7[%c0_24, %c0_25, %c0_26], %20 {strides = array<i32>} : memref<2x64x1xf32, #tpu.memory_space<vmem>>, vector<2x64x1xf32>,
    } else {
    }
    %c0 = arith.constant 0 : index
    %c0_1 = arith.constant 0 : index
    %c0_2 = arith.constant 0 : index
    %c0_3 = arith.constant 0 : index
    %3 = vector.load %arg2[%c0, %c0_1, %c0_2, %c0_3] : memref<1x2x64x256xf32, #tpu.memory_space<vmem>>, vector<1x2x64x256xf32>
    %4 = vector.shape_cast %3 : vector<1x2x64x256xf32> to vector<2x64x256xf32>
    %c0_4 = arith.constant 0 : index
    %c0_5 = arith.constant 0 : index
    %c0_6 = arith.constant 0 : index
    %5 = vector.load %arg6[%c0_4, %c0_5, %c0_6] : memref<2x64x1xf32, #tpu.memory_space<vmem>>, vector<2x64x1xf32>
    %cst = arith.constant dense<0.000000e+00> : vector<2x64xf32>
    %6 = vector.multi_reduction <add>, %4, %cst [2] : vector<2x64x256xf32> to vector<2x64xf32>
    %7 = vector.shape_cast %6 : vector<2x64xf32> to vector<2x64x1xf32>
    %8 = arith.addf %5, %7 : vector<2x64x1xf32>
    %c0_7 = arith.constant 0 : index
    %c0_8 = arith.constant 0 : index
    %c0_9 = arith.constant 0 : index
    %9 = vector.load %arg6[%c0_7, %c0_8, %c0_9] : memref<2x64x1xf32, #tpu.memory_space<vmem>>, vector<2x64x1xf32>
    tpu.vector_store %arg6[%c0_7, %c0_8, %c0_9], %8 {strides = array<i32>} : memref<2x64x1xf32, #tpu.memory_space<vmem>>, vector<2x64x1xf32>,
    %c0_10 = arith.constant 0 : index
    %c0_11 = arith.constant 0 : index
    %c0_12 = arith.constant 0 : index
    %10 = vector.load %arg7[%c0_10, %c0_11, %c0_12] : memref<2x64x1xf32, #tpu.memory_space<vmem>>, vector<2x64x1xf32>
    %cst_13 = arith.constant dense<0xFF800000> : vector<2x64xf32>
    %11 = vector.multi_reduction <maximumf>, %4, %cst_13 [2] : vector<2x64x256xf32> to vector<2x64xf32>
    %12 = vector.shape_cast %11 : vector<2x64xf32> to vector<2x64x1xf32>
    %13 = arith.maximumf %10, %12 : vector<2x64x1xf32>
    %c0_14 = arith.constant 0 : index
    %c0_15 = arith.constant 0 : index
    %c0_16 = arith.constant 0 : index
    %14 = vector.load %arg7[%c0_14, %c0_15, %c0_16] : memref<2x64x1xf32, #tpu.memory_space<vmem>>, vector<2x64x1xf32>
    tpu.vector_store %arg7[%c0_14, %c0_15, %c0_16], %13 {strides = array<i32>} : memref<2x64x1xf32, #tpu.memory_space<vmem>>, vector<2x64x1xf32>,
    %c0_i32_17 = arith.constant 0 : i32
    %15 = arith.cmpi eq, %arg1, %c0_i32_17 : i32
    %16 = arith.extui %15 : i1 to i32
    %c0_i32_18 = arith.constant 0 : i32
    %17 = arith.cmpi ne, %16, %c0_i32_18 : i32
    scf.if %17 {
      %c0_19 = arith.constant 0 : index
      %c0_20 = arith.constant 0 : index
      %c0_21 = arith.constant 0 : index
      %18 = vector.load %arg6[%c0_19, %c0_20, %c0_21] : memref<2x64x1xf32, #tpu.memory_space<vmem>>, vector<2x64x1xf32>
      %cst_22 = arith.constant dense<0.000000e+00> : vector<2x64xf32>
      %19 = vector.multi_reduction <add>, %18, %cst_22 [2] : vector<2x64x1xf32> to vector<2x64xf32>
      %cst_23 = arith.constant 3.906250e-03 : f32
      %20 = vector.broadcast %cst_23 : f32 to vector<2x64xf32>
      %21 = arith.mulf %19, %20 : vector<2x64xf32>
      %c0_24 = arith.constant 0 : index
      %c0_25 = arith.constant 0 : index
      %c0_26 = arith.constant 0 : index
      %22 = vector.load %arg7[%c0_24, %c0_25, %c0_26] : memref<2x64x1xf32, #tpu.memory_space<vmem>>, vector<2x64x1xf32>
      %cst_27 = arith.constant dense<0xFF800000> : vector<2x64xf32>
      %23 = vector.multi_reduction <maximumf>, %22, %cst_27 [2] : vector<2x64x1xf32> to vector<2x64xf32>
      %24 = tpu.concatenate %21, %23 in 0 : vector<2x64xf32>, vector<2x64xf32> -> vector<4x64xf32>
      %c0_28 = arith.constant 0 : index
      %c0_29 = arith.constant 0 : index
      %25 = vector.load %arg3[%c0_28, %c0_29] : memref<64x4xf32, #tpu.memory_space<vmem>>, vector<64x4xf32>
      %c0_30 = arith.constant 0 : index
      %c0_31 = arith.constant 0 : index
      %26 = vector.load %arg4[%c0_30, %c0_31] : memref<4x64xf32, #tpu.memory_space<vmem>>, vector<4x64xf32>
      %cst_32 = arith.constant dense<0.000000e+00> : vector<4x4xf32>
      %27 = tpu.matmul %24, %25, %cst_32 {dimension_numbers = #tpu.dot_dimension_numbers<[1], [0], [0], [1], [0, 0, 1, 1], [], []>} : vector<4x64xf32>, vector<64x4xf32>, vector<4x4xf32> -> vector<4x4xf32>
      %cst_33 = arith.constant 0.000000e+00 : f32
      %28 = vector.broadcast %cst_33 : f32 to vector<4x4xf32>
      %29 = arith.maximumf %27, %28 : vector<4x4xf32>
      %cst_34 = arith.constant dense<0.000000e+00> : vector<4x64xf32>
      %30 = tpu.matmul %29, %26, %cst_34 {dimension_numbers = #tpu.dot_dimension_numbers<[1], [0], [0], [1], [0, 0, 1, 1], [], []>} : vector<4x4xf32>, vector<4x64xf32>, vector<4x64xf32> -> vector<4x64xf32>
      %31 = vector.extract_strided_slice %30 {offsets = [0, 0], sizes = [2, 64], strides = [1, 1]} : vector<4x64xf32> to vector<2x64xf32>
      %32 = vector.extract_strided_slice %30 {offsets = [2, 0], sizes = [2, 64], strides = [1, 1]} : vector<4x64xf32> to vector<2x64xf32>
      %33 = arith.addf %31, %32 : vector<2x64xf32>
      %34 = arith.negf %33 : vector<2x64xf32>
      %35 = math.exp %34 : vector<2x64xf32>
      %cst_35 = arith.constant 1.000000e+00 : f32
      %36 = vector.broadcast %cst_35 : f32 to vector<2x64xf32>
      %37 = arith.addf %36, %35 : vector<2x64xf32>
      %38 = arith.divf %36, %37 : vector<2x64xf32>
      %c0_36 = arith.constant 0 : index
      %c0_37 = arith.constant 0 : index
      %c0_38 = arith.constant 0 : index
      %39 = vector.load %arg5[%c0_36, %c0_37, %c0_38] : memref<1x2x64xf32, #tpu.memory_space<vmem>>, vector<1x2x64xf32>
      %40 = vector.shape_cast %39 : vector<1x2x64xf32> to vector<2x64xf32>
      %41 = vector.shape_cast %38 : vector<2x64xf32> to vector<1x2x64xf32>
      tpu.vector_store %arg5[%c0_36, %c0_37, %c0_38], %41 {strides = array<i32>} : memref<1x2x64xf32, #tpu.memory_space<vmem>>, vector<1x2x64xf32>,
    } else {
    }
    return
  }
  func.func @transform_0(%arg0: i32, %arg1: i32) -> (i32, i32, i32, i32) {
    %c0_i32 = arith.constant 0 : i32
    %c0_i32_0 = arith.constant 0 : i32
    %c0_i32_1 = arith.constant 0 : i32
    return %arg0, %c0_i32, %c0_i32_0, %arg1 : i32, i32, i32, i32
  }
  func.func @transform_1(%arg0: i32, %arg1: i32) -> (i32, i32) {
    %c0_i32 = arith.constant 0 : i32
    %c0_i32_0 = arith.constant 0 : i32
    %c0_i32_1 = arith.constant 0 : i32
    return %c0_i32, %c0_i32_0 : i32, i32
  }
  func.func @transform_2(%arg0: i32, %arg1: i32) -> (i32, i32) {
    %c0_i32 = arith.constant 0 : i32
    %c0_i32_0 = arith.constant 0 : i32
    %c0_i32_1 = arith.constant 0 : i32
    return %c0_i32, %c0_i32_0 : i32, i32
  }
  func.func @transform_3(%arg0: i32, %arg1: i32) -> (i32, i32, i32) {
    %c0_i32 = arith.constant 0 : i32
    %c0_i32_0 = arith.constant 0 : i32
    %c0_i32_1 = arith.constant 0 : i32
    return %arg0, %c0_i32, %c0_i32_0 : i32, i32, i32
  }
}

</mosaic_0001>

<bundles_post_ra>
// kernel: tpu_custom_call.1
= control target key start
LH: loop header
LB: loop body
LE: loop exit
PB: predicated region body
PF: predicated region fallthrough
CT: control target
= control target key end

     0   :  { %8 = vsyncpa [#allocation5], 0  ;;  %s950_s0 = inlined_call_operand.hbm [shape: f32[1,2,64,256], index: 0, kind: input, shape index: {}]   ;;  %s951_s1 = inlined_call_operand.vmem [shape: f32[64,4], index: 1, kind: input, shape index: {}]   ;;  %s952_s2 = inlined_call_operand.vmem [shape: f32[4,64], index: 2, kind: input, shape index: {}]   ;;  %s953_s3 = inlined_call_operand.hbm [shape: f32[1,2,64], index: 3, kind: output, shape index: {}]  }
   0x1   :  { %9 = vsyncpa [#allocation6], 0  ;;  %s14_s14 = sshll.u32 %s950_s0, 4  ;;  %s746_s15 = smov [#allocation4]   ;;  %s15_s14 = int_to_ptr.hbm [resolvable:$true] %s14_s14 }
   0x2   :  { %s16_s16 = sshll.u32 %s746_s15, 4  ;;  %s747_s17 = smov 256   ;;  %s17_s16 = int_to_ptr.vmem [resolvable:$true] %s16_s16 }
   0x3   :  { %s748_s18 = smov 16  }
   0x4   :  { %22 = dma.hbm_to_vmem [thread:$0]  %s15_s14, 4096, %s17_s16, [#allocation5], %s747_s17, %s747_s17, %s748_s18  }
   0x5   :  { %742 = dma.done.wait [#allocation5], 4096  }
   0x6   :  { %743 = vsyncadd [#allocation5], 4294963200  ;;  %v84_v0 = vld [vmem:[#allocation4 + $0x80] sm:$0xff]  ;;  %v85_v1 = vld [vmem:[#allocation4 + $0x88] sm:$0xff]  ;;  %vm35_vm0 = vcmask 7168   ;;  %v749_v49 = vmov 0.0  }
   0x7   :  { %v72_v2 = vld [vmem:[#allocation4 + $0x20] sm:$0xff]  ;;  %v140_v3 = vadd.f32 %v85_v1, %v84_v0  ;;  %v73_v4 = vld [vmem:[#allocation4 + $0x28] sm:$0xff]  ;;  %v86_v9 = vld [vmem:[#allocation4 + $0x90] sm:$0xff]  ;;  %v237_v25 = vmax.f32 %v84_v0, %v85_v1  ;;  %44 = vst.msk [vmem:[#allocation2 + $0x40] sm:$0xff] %vm35_vm0, %v749_v49  ;;  %v750_v1 = vmov -inf   ;;  %vm429_vm1 = vcmask 130112  }
   0x8   :  { %v68_v5 = vld [vmem:[#allocation4] sm:$0xff]  ;;  %v69_v6 = vld [vmem:[#allocation4 + $0x8] sm:$0xff]  ;;  %v122_v7 = vadd.f32 %v73_v4, %v72_v2  ;;  %v87_v10 = vld [vmem:[#allocation4 + $0x98] sm:$0xff]  ;;  %v219_v34 = vmax.f32 %v72_v2, %v73_v4  ;;  %36 = vst.msk [vmem:[#allocation2] sm:$0xff] %vm35_vm0, %v749_v49  ;;  %v751_v2 = vmov 0   ;;  %vm433_vm2 = vcmask 195712  }
   0x9   :  { %v116_v8 = vadd.f32 %v69_v6, %v68_v5  ;;  %141 = vadd.xlane.f32.xlu1 %v140_v3  ;;  %v88_v11 = vld [vmem:[#allocation4 + $0xa0] sm:$0xff]  ;;  %v89_v12 = vld [vmem:[#allocation4 + $0xa8] sm:$0xff]  ;;  %v70_v13 = vld [vmem:[#allocation4 + $0x10] sm:$0xff]  ;;  %v143_v15 = vadd.f32 %v87_v10, %v86_v9  ;;  %v213_v23 = vmax.f32 %v68_v5, %v69_v6  ;;  %v240_v27 = vmax.f32 %v86_v9, %v87_v10  ;;  %s666_s11 = sshll.u32 %s953_s3, 4  ;;  %s667_s11 = int_to_ptr.hbm [resolvable:$true] %s666_s11 }
   0xa   :  { %123 = vadd.xlane.f32.xlu2 %v122_v7  ;;  %v71_v14 = vld [vmem:[#allocation4 + $0x18] sm:$0xff]  ;;  %v146_v16 = vadd.f32 %v89_v12, %v88_v11  ;;  %v90_v18 = vld [vmem:[#allocation4 + $0xb0] sm:$0xff]  ;;  %v92_v28 = vld [vmem:[#allocation4 + $0xc0] sm:$0xff]  ;;  %v243_v40 = vmax.f32 %v88_v11, %v89_v12  ;;  %37 = vst.msk [vmem:[#allocation2 + $0x8] sm:$0xff] %vm35_vm0, %v749_v49  ;;  %688 = vset.pattern.permute.xlu1 %v751_v2  ;;  %vm437_vm3 = vcmask 261312   ;;  %vm441_vm4 = vcmask 326912  }
   0xb   :  { %117 = vadd.xlane.f32.xlu0 %v116_v8  ;;  %v119_v17 = vadd.f32 %v71_v14, %v70_v13  ;;  %v91_v19 = vld [vmem:[#allocation4 + $0xb8] sm:$0xff]  ;;  %v74_v20 = vld [vmem:[#allocation4 + $0x30] sm:$0xff]  ;;  %v216_v26 = vmax.f32 %v70_v13, %v71_v14  ;;  %v93_v29 = vld [vmem:[#allocation4 + $0xc8] sm:$0xff]  ;;  %38 = vst.msk [vmem:[#allocation2 + $0x10] sm:$0xff] %vm35_vm0, %v749_v49  ;;  %687 = vset.pattern.permute.xlu2 %v751_v2  ;;  %vm445_vm5 = vcmask 392512   ;;  %vm449_vm6 = vcmask 458112  }
   0xc   :  { %v75_v21 = vld [vmem:[#allocation4 + $0x38] sm:$0xff]  ;;  %v149_v22 = vadd.f32 %v91_v19, %v90_v18  ;;  %v76_v30 = vld [vmem:[#allocation4 + $0x40] sm:$0xff]  ;;  %v77_v31 = vld [vmem:[#allocation4 + $0x48] sm:$0xff]  ;;  %v152_v32 = vadd.f32 %v93_v29, %v92_v28  ;;  %v246_v44 = vmax.f32 %v90_v18, %v91_v19  ;;  %v249_v51 = vmax.f32 %v92_v28, %v93_v29  ;;  %39 = vst.msk [vmem:[#allocation2 + $0x18] sm:$0xff] %vm35_vm0, %v749_v49 }
   0xd   :  { %v125_v24 = vadd.f32 %v75_v21, %v74_v20  ;;  %v128_v33 = vadd.f32 %v77_v31, %v76_v30  ;;  %v78_v35 = vld [vmem:[#allocation4 + $0x50] sm:$0xff]  ;;  %v79_v36 = vld [vmem:[#allocation4 + $0x58] sm:$0xff]  ;;  %v80_v42 = vld [vmem:[#allocation4 + $0x60] sm:$0xff]  ;;  %v222_v46 = vmax.f32 %v74_v20, %v75_v21  ;;  %v225_v50 = vmax.f32 %v76_v30, %v77_v31  ;;  %40 = vst.msk [vmem:[#allocation2 + $0x20] sm:$0xff] %vm35_vm0, %v749_v49 }
   0xe   :  { %v94_v37 = vld [vmem:[#allocation4 + $0xd0] sm:$0xff]  ;;  %v95_v38 = vld [vmem:[#allocation4 + $0xd8] sm:$0xff]  ;;  %v131_v39 = vadd.f32 %v79_v36, %v78_v35  ;;  %v81_v43 = vld [vmem:[#allocation4 + $0x68] sm:$0xff]  ;;  %41 = vst.msk [vmem:[#allocation2 + $0x28] sm:$0xff] %vm35_vm0, %v749_v49  ;;  %v228_v58 = vmax.f32 %v78_v35, %v79_v36  ;;  %689 = vset.pattern.permute.xlu0 %v751_v2  ;;  %vm453_vm7 = vcmask 523712   ;;  %vm470_vm8 = vcmask 1041409  }
   0xf   :  { %v155_v41 = vadd.f32 %v95_v38, %v94_v37  ;;  %v134_v45 = vadd.f32 %v81_v43, %v80_v42  ;;  %v96_v47 = vld [vmem:[#allocation4 + $0xe0] sm:$0xff]  ;;  %v97_v48 = vld [vmem:[#allocation4 + $0xe8] sm:$0xff]  ;;  %v98_v53 = vld [vmem:[#allocation4 + $0xf0] sm:$0xff]  ;;  %42 = vst.msk [vmem:[#allocation2 + $0x30] sm:$0xff] %vm35_vm0, %v749_v49  ;;  %v231_v60 = vmax.f32 %v80_v42, %v81_v43  ;;  %v252_v61 = vmax.f32 %v94_v37, %v95_v38 }
  0x10   :  { %v158_v52 = vadd.f32 %v97_v48, %v96_v47  ;;  %v99_v54 = vld [vmem:[#allocation4 + $0xf8] sm:$0xff]  ;;  %v82_v55 = vld [vmem:[#allocation4 + $0x70] sm:$0xff]  ;;  %43 = vst.msk [vmem:[#allocation2 + $0x38] sm:$0xff] %vm35_vm0, %v749_v49  ;;  %v255_v62 = vmax.f32 %v96_v47, %v97_v48  ;;  %v108_v3 = vld [vmem:[#allocation2 + $0x40] sm:$0xff]  ;;  %vm567_vm9 = vcmask 1043459   ;;  %vm570_vm10 = vcmask 1041408  }
  0x11   :  { %144 = vadd.xlane.f32.xlu1 %v143_v15  ;;  %v83_v56 = vld [vmem:[#allocation4 + $0x78] sm:$0xff]  ;;  %45 = vst.msk [vmem:[#allocation2 + $0x48] sm:$0xff] %vm35_vm0, %v749_v49  ;;  %v161_v57 = vadd.f32 %v99_v54, %v98_v53  ;;  %v258_v63 = vmax.f32 %v98_v53, %v99_v54  ;;  %v100_v5 = vld [vmem:[#allocation2] sm:$0xff]  ;;  %v101_v14 = vld [vmem:[#allocation2 + $0x8] sm:$0xff]  ;;  %vm581_vm11 = vcmask 523264   ;;  %vm610_vm12 = vcmask 1043456  }
  0x12   :  { %147 = vadd.xlane.f32.xlu2 %v146_v16  ;;  %46 = vst.msk [vmem:[#allocation2 + $0x50] sm:$0xff] %vm35_vm0, %v749_v49  ;;  %v137_v59 = vadd.f32 %v83_v56, %v82_v55  ;;  %v234_v0 = vmax.f32 %v82_v55, %v83_v56  ;;  %v102_v4 = vld [vmem:[#allocation2 + $0x10] sm:$0xff]  ;;  %vm606_vm13 = vcmask 31744  }
  0x13   :  { %120 = vadd.xlane.f32.xlu0 %v119_v17  ;;  %47 = vst.msk [vmem:[#allocation2 + $0x58] sm:$0xff] %vm35_vm0, %v749_v49 }
  0x14   :  { %48 = vst.msk [vmem:[#allocation2 + $0x60] sm:$0xff] %vm35_vm0, %v749_v49 }
  0x15   :  { %49 = vst.msk [vmem:[#allocation2 + $0x68] sm:$0xff] %vm35_vm0, %v749_v49 }
  0x16   :  { %50 = vst.msk [vmem:[#allocation2 + $0x70] sm:$0xff] %vm35_vm0, %v749_v49 }
  0x17   :  { %51 = vst.msk [vmem:[#allocation2 + $0x78] sm:$0xff] %vm35_vm0, %v749_v49 }
  0x18   :  { %52 = vst.msk [vmem:[#allocation3] sm:$0xff] %vm35_vm0, %v750_v1  ;;  %v109_v12 = vld [vmem:[#allocation2 + $0x48] sm:$0xff] }
  0x19   :  { %150 = vadd.xlane.f32.xlu1 %v149_v22  ;;  %53 = vst.msk [vmem:[#allocation3 + $0x8] sm:$0xff] %vm35_vm0, %v750_v1  ;;  %v110_v13 = vld [vmem:[#allocation2 + $0x50] sm:$0xff] }
  0x1a   :  { %214 = vmax.xlane.f32.xlu2 %v213_v23  ;;  %54 = vst.msk [vmem:[#allocation3 + $0x10] sm:$0xff] %vm35_vm0, %v750_v1  ;;  %v111_v21 = vld [vmem:[#allocation2 + $0x58] sm:$0xff] }
  0x1b   :  { %126 = vadd.xlane.f32.xlu0 %v125_v24  ;;  %55 = vst.msk [vmem:[#allocation3 + $0x18] sm:$0xff] %vm35_vm0, %v750_v1  ;;  %v103_v23 = vld [vmem:[#allocation2 + $0x18] sm:$0xff] }
  0x1c   :  { %56 = vst.msk [vmem:[#allocation3 + $0x20] sm:$0xff] %vm35_vm0, %v750_v1  ;;  %v113_v54 = vld [vmem:[#allocation2 + $0x68] sm:$0xff] }
  0x1d   :  { %57 = vst.msk [vmem:[#allocation3 + $0x28] sm:$0xff] %vm35_vm0, %v750_v1 }
  0x1e   :  { %58 = vst.msk [vmem:[#allocation3 + $0x30] sm:$0xff] %vm35_vm0, %v750_v1 }
  0x1f   :  { %59 = vst.msk [vmem:[#allocation3 + $0x38] sm:$0xff] %vm35_vm0, %v750_v1  ;;  %v197_v22 = vld [vmem:[#allocation3] sm:$0xff] }
  0x20   :  { %60 = vst.msk [vmem:[#allocation3 + $0x40] sm:$0xff] %vm35_vm0, %v750_v1  ;;  %v198_v31 = vld [vmem:[#allocation3 + $0x8] sm:$0xff] }
  0x21   :  { %238 = vmax.xlane.f32.xlu1 %v237_v25  ;;  %61 = vst.msk [vmem:[#allocation3 + $0x48] sm:$0xff] %vm35_vm0, %v750_v1  ;;  %v199_v42 = vld [vmem:[#allocation3 + $0x10] sm:$0xff] }
  0x22   :  { %241 = vmax.xlane.f32.xlu2 %v240_v27  ;;  %62 = vst.msk [vmem:[#allocation3 + $0x50] sm:$0xff] %vm35_vm0, %v750_v1 }
  0x23   :  { %217 = vmax.xlane.f32.xlu0 %v216_v26  ;;  %63 = vst.msk [vmem:[#allocation3 + $0x58] sm:$0xff] %vm35_vm0, %v750_v1 }
  0x24   :  { %64 = vst.msk [vmem:[#allocation3 + $0x60] sm:$0xff] %vm35_vm0, %v750_v1 }
  0x25   :  { %65 = vst.msk [vmem:[#allocation3 + $0x68] sm:$0xff] %vm35_vm0, %v750_v1 }
  0x26   :  { %66 = vst.msk [vmem:[#allocation3 + $0x70] sm:$0xff] %vm35_vm0, %v750_v1 }
  0x27   :  { %67 = vst.msk [vmem:[#allocation3 + $0x78] sm:$0xff] %vm35_vm0, %v750_v1  ;;  %v205_v30 = vld [vmem:[#allocation3 + $0x40] sm:$0xff]  ;;  %v200_v1 = vld [vmem:[#allocation3 + $0x18] sm:$0xff] }
  0x29   :  { %153 = vadd.xlane.f32.xlu1 %v152_v32  ;;  %v206_v32 = vld [vmem:[#allocation3 + $0x48] sm:$0xff] }
  0x2a   :  { %220 = vmax.xlane.f32.xlu2 %v219_v34 }
  0x2b   :  { %129 = vadd.xlane.f32.xlu0 %v128_v33 }
  0x31   :  { %132 = vadd.xlane.f32.xlu1 %v131_v39 }
  0x32   :  { %156 = vadd.xlane.f32.xlu2 %v155_v41  ;;  %v104_v41 = vld [vmem:[#allocation2 + $0x20] sm:$0xff] }
  0x33   :  { %244 = vmax.xlane.f32.xlu0 %v243_v40  ;;  %v112_v40 = vld [vmem:[#allocation2 + $0x60] sm:$0xff] }
  0x39   :  { %247 = vmax.xlane.f32.xlu1 %v246_v44 }
  0x3a   :  { %135 = vadd.xlane.f32.xlu2 %v134_v45 }
  0x3b   :  { %223 = vmax.xlane.f32.xlu0 %v222_v46 }
  0x41   :  { %226 = vmax.xlane.f32.xlu1 %v225_v50 }
  0x42   :  { %250 = vmax.xlane.f32.xlu2 %v249_v51  ;;  %v105_v51 = vld [vmem:[#allocation2 + $0x28] sm:$0xff] }
  0x43   :  { %159 = vadd.xlane.f32.xlu0 %v158_v52  ;;  %v207_v52 = vld [vmem:[#allocation3 + $0x50] sm:$0xff] }
  0x49   :  { %162 = vadd.xlane.f32.xlu1 %v161_v57 }
  0x4a   :  { %229 = vmax.xlane.f32.xlu2 %v228_v58 }
  0x4b   :  { %138 = vadd.xlane.f32.xlu0 %v137_v59 }
  0x51   :  { %232 = vmax.xlane.f32.xlu1 %v231_v60 }
  0x52   :  { %256 = vmax.xlane.f32.xlu2 %v255_v62 }
  0x53   :  { %253 = vmax.xlane.f32.xlu0 %v252_v61 }
  0x59   :  { %259 = vmax.xlane.f32.xlu1 %v258_v63  ;;  %v208_v63 = vld [vmem:[#allocation3 + $0x58] sm:$0xff] }
  0x5b   :  { %235 = vmax.xlane.f32.xlu0 %v234_v0  ;;  %v106_v0 = vld [vmem:[#allocation2 + $0x30] sm:$0xff] }
  0x7c   :  { %v142_v6 = vpop.xlane.xlu1 %141 }
  0x7d   :  { %v172_v7 = vadd.f32 %v142_v6, %v108_v3  ;;  %v124_v8 = vpop.xlane.xlu2 %123 }
  0x7e   :  { %v118_v9 = vpop.xlane.xlu0 %117  ;;  %v166_v10 = vadd.f32 %v124_v8, %v102_v4 }
  0x7f   :  { %v164_v11 = vadd.f32 %v118_v9, %v100_v5  ;;  %189 = vst.msk [vmem:[#allocation2 + $0x40] sm:$0xff] %vm35_vm0, %v172_v7 }
  0x80   :  { %183 = vst.msk [vmem:[#allocation2 + $0x10] sm:$0xff] %vm35_vm0, %v166_v10 }
  0x81   :  { %181 = vst.msk [vmem:[#allocation2] sm:$0xff] %vm35_vm0, %v164_v11 }
  0x84   :  { %v145_v15 = vpop.xlane.xlu1 %144 }
  0x85   :  { %v173_v16 = vadd.f32 %v145_v15, %v109_v12  ;;  %v148_v17 = vpop.xlane.xlu2 %147  ;;  %v209_v15 = vld [vmem:[#allocation3 + $0x60] sm:$0xff] }
  0x86   :  { %v121_v18 = vpop.xlane.xlu0 %120  ;;  %v174_v19 = vadd.f32 %v148_v17, %v110_v13  ;;  %v304_v12 = vld [vmem:[#allocation2 + $0x40] sm:$0xff] }
  0x87   :  { %v165_v20 = vadd.f32 %v121_v18, %v101_v14  ;;  %190 = vst.msk [vmem:[#allocation2 + $0x48] sm:$0xff] %vm35_vm0, %v173_v16  ;;  %v201_v13 = vld [vmem:[#allocation3 + $0x20] sm:$0xff]  ;;  %v114_v16 = vld [vmem:[#allocation2 + $0x70] sm:$0xff] }
  0x88   :  { %191 = vst.msk [vmem:[#allocation2 + $0x50] sm:$0xff] %vm35_vm0, %v174_v19  ;;  %v296_v53 = vld [vmem:[#allocation2] sm:$0xff] }
  0x89   :  { %182 = vst.msk [vmem:[#allocation2 + $0x8] sm:$0xff] %vm35_vm0, %v165_v20  ;;  %v328_v61 = vmul.f32 0.00390625, %v296_v53 }
  0x8c   :  { %v151_v24 = vpop.xlane.xlu1 %150 }
  0x8d   :  { %v175_v25 = vadd.f32 %v151_v24, %v111_v21  ;;  %v215_v26 = vpop.xlane.xlu2 %214 }
  0x8e   :  { %v127_v27 = vpop.xlane.xlu0 %126  ;;  %v261_v28 = vmax.f32 %v197_v22, %v215_v26  ;;  %v305_v2 = vld [vmem:[#allocation2 + $0x48] sm:$0xff]  ;;  %v336_v22 = vmul.f32 0.00390625, %v304_v12 }
  0x8f   :  { %v167_v29 = vadd.f32 %v127_v27, %v103_v23  ;;  %192 = vst.msk [vmem:[#allocation2 + $0x58] sm:$0xff] %vm35_vm0, %v175_v25  ;;  %v337_v11 = vmul.f32 0.00390625, %v305_v2  ;;  %v306_v17 = vld [vmem:[#allocation2 + $0x50] sm:$0xff] }
  0x90   :  { %277 = vst.msk [vmem:[#allocation3] sm:$0xff] %vm35_vm0, %v261_v28  ;;  %v297_v14 = vld [vmem:[#allocation2 + $0x8] sm:$0xff]  ;;  %v338_v26 = vmul.f32 0.00390625, %v306_v17  ;;  %v298_v27 = vld [vmem:[#allocation2 + $0x10] sm:$0xff]  ;;  %v115_v28 = vld [vmem:[#allocation2 + $0x78] sm:$0xff] }
  0x91   :  { %184 = vst.msk [vmem:[#allocation2 + $0x18] sm:$0xff] %vm35_vm0, %v167_v29  ;;  %v329_v23 = vmul.f32 0.00390625, %v297_v14 }
  0x94   :  { %v239_v33 = vpop.xlane.xlu1 %238 }
  0x95   :  { %v269_v34 = vmax.f32 %v205_v30, %v239_v33  ;;  %v242_v36 = vpop.xlane.xlu2 %241  ;;  %v202_v30 = vld [vmem:[#allocation3 + $0x28] sm:$0xff] }
  0x96   :  { %v218_v35 = vpop.xlane.xlu0 %217  ;;  %v270_v38 = vmax.f32 %v206_v32, %v242_v36  ;;  %v307_v29 = vld [vmem:[#allocation2 + $0x58] sm:$0xff] }
  0x97   :  { %v262_v37 = vmax.f32 %v198_v31, %v218_v35  ;;  %285 = vst.msk [vmem:[#allocation3 + $0x40] sm:$0xff] %vm35_vm0, %v269_v34  ;;  %v344_v39 = vld [vmem:[#allocation3] sm:$0xff]  ;;  %v107_v31 = vld [vmem:[#allocation2 + $0x38] sm:$0xff] }
  0x98   :  { %490 = vperm.xlu2 %687, %v344_v39   ;;  %286 = vst.msk [vmem:[#allocation3 + $0x48] sm:$0xff] %vm35_vm0, %v270_v38  ;;  %v299_v32 = vld [vmem:[#allocation2 + $0x18] sm:$0xff]  ;;  %v330_v38 = vmul.f32 0.00390625, %v298_v27 }
  0x99   :  { %278 = vst.msk [vmem:[#allocation3 + $0x8] sm:$0xff] %vm35_vm0, %v262_v37  ;;  %v339_v37 = vmul.f32 0.00390625, %v307_v29 }
  0x9c   :  { %v154_v43 = vpop.xlane.xlu1 %153 }
  0x9d   :  { %v221_v45 = vpop.xlane.xlu2 %220  ;;  %v176_v46 = vadd.f32 %v154_v43, %v112_v40 }
  0x9e   :  { %v130_v44 = vpop.xlane.xlu0 %129  ;;  %v352_v48 = vld [vmem:[#allocation3 + $0x40] sm:$0xff]  ;;  %v263_v49 = vmax.f32 %v199_v42, %v221_v45  ;;  %v203_v42 = vld [vmem:[#allocation3 + $0x30] sm:$0xff] }
  0x9f   :  { %v168_v47 = vadd.f32 %v130_v44, %v104_v41  ;;  %193 = vst.msk [vmem:[#allocation2 + $0x60] sm:$0xff] %vm35_vm0, %v176_v46  ;;  %v353_v57 = vld [vmem:[#allocation3 + $0x48] sm:$0xff]  ;;  %v331_v41 = vmul.f32 0.00390625, %v299_v32  ;;  %v211_v45 = vld [vmem:[#allocation3 + $0x70] sm:$0xff] }
  0xa0   :  { %v345_v50 = vld [vmem:[#allocation3 + $0x8] sm:$0xff]  ;;  %514 = vperm.xlu2 %687, %v352_v48   ;;  %279 = vst.msk [vmem:[#allocation3 + $0x10] sm:$0xff] %vm35_vm0, %v263_v49 }
  0xa1   :  { %185 = vst.msk [vmem:[#allocation2 + $0x20] sm:$0xff] %vm35_vm0, %v168_v47  ;;  %493 = vperm.xlu1 %688, %v345_v50   ;;  %v210_v44 = vld [vmem:[#allocation3 + $0x68] sm:$0xff] }
  0xa4   :  { %v133_v55 = vpop.xlane.xlu1 %132 }
  0xa5   :  { %v169_v58 = vadd.f32 %v133_v55, %v105_v51  ;;  %v157_v59 = vpop.xlane.xlu2 %156  ;;  %v212_v55 = vld [vmem:[#allocation3 + $0x78] sm:$0xff] }
  0xa6   :  { %v245_v56 = vpop.xlane.xlu0 %244  ;;  %v177_v62 = vadd.f32 %v157_v59, %v113_v54 }
  0xa7   :  { %v271_v60 = vmax.f32 %v207_v52, %v245_v56  ;;  %186 = vst.msk [vmem:[#allocation2 + $0x28] sm:$0xff] %vm35_vm0, %v169_v58  ;;  %v346_v4 = vld [vmem:[#allocation3 + $0x10] sm:$0xff]  ;;  %v308_v56 = vld [vmem:[#allocation2 + $0x60] sm:$0xff] }
  0xa8   :  { %377 = vperm.xlu2 %687, %v328_v61   ;;  %194 = vst.msk [vmem:[#allocation2 + $0x68] sm:$0xff] %vm35_vm0, %v177_v62  ;;  %v300_v43 = vld [vmem:[#allocation2 + $0x20] sm:$0xff]  ;;  %v340_v62 = vmul.f32 0.00390625, %v308_v56 }
  0xa9   :  { %287 = vst.msk [vmem:[#allocation3 + $0x50] sm:$0xff] %vm35_vm0, %v271_v60  ;;  %517 = vperm.xlu1 %688, %v353_v57   ;;  %v332_v51 = vmul.f32 0.00390625, %v300_v43  ;;  %v204_v57 = vld [vmem:[#allocation3 + $0x38] sm:$0xff]  ;;  %v572_v56 = vld [vmem:[%s951_s1] sm:$0xff] }
  0xaa   :  { %v579_v43 = vld [vmem:[%s951_s1 + $0x38] sm:$0xff] }
  0xab   :  { %593 = vmatpush.msra.mxu0 %v579_v43 }
  0xac   :  { %v248_v3 = vpop.xlane.xlu1 %247 }
  0xad   :  { %v272_v5 = vmax.f32 %v208_v63, %v248_v3  ;;  %v136_v6 = vpop.xlane.xlu2 %135 }
  0xae   :  { %v224_v7 = vpop.xlane.xlu0 %223  ;;  %v170_v8 = vadd.f32 %v136_v6, %v106_v0 }
  0xaf   :  { %v264_v9 = vmax.f32 %v200_v1, %v224_v7  ;;  %288 = vst.msk [vmem:[#allocation3 + $0x58] sm:$0xff] %vm35_vm0, %v272_v5  ;;  %v301_v1 = vld [vmem:[#allocation2 + $0x28] sm:$0xff] }
  0xb0   :  { %v354_v10 = vld [vmem:[#allocation3 + $0x50] sm:$0xff]  ;;  %187 = vst.msk [vmem:[#allocation2 + $0x30] sm:$0xff] %vm35_vm0, %v170_v8  ;;  %404 = vperm.xlu2 %687, %v337_v11   ;;  %v309_v2 = vld [vmem:[#allocation2 + $0x68] sm:$0xff] }
  0xb1   :  { %520 = vperm.xlu0 %689, %v354_v10   ;;  %496 = vperm.xlu1 %688, %v346_v4   ;;  %280 = vst.msk [vmem:[#allocation3 + $0x18] sm:$0xff] %vm35_vm0, %v264_v9  ;;  %v333_v4 = vmul.f32 0.00390625, %v301_v1  ;;  %v341_v5 = vmul.f32 0.00390625, %v309_v2 }
  0xb4   :  { %v227_v18 = vpop.xlane.xlu1 %226 }
  0xb5   :  { %v265_v19 = vmax.f32 %v201_v13, %v227_v18  ;;  %v251_v20 = vpop.xlane.xlu2 %250 }
  0xb6   :  { %v160_v21 = vpop.xlane.xlu0 %159  ;;  %v273_v24 = vmax.f32 %v209_v15, %v251_v20  ;;  %v355_v52 = vld [vmem:[#allocation3 + $0x58] sm:$0xff] }
  0xb7   :  { %v178_v25 = vadd.f32 %v160_v21, %v114_v16  ;;  %281 = vst.msk [vmem:[#allocation3 + $0x20] sm:$0xff] %vm35_vm0, %v265_v19  ;;  %v302_v7 = vld [vmem:[#allocation2 + $0x30] sm:$0xff] }
  0xb8   :  { %289 = vst.msk [vmem:[#allocation3 + $0x60] sm:$0xff] %vm35_vm0, %v273_v24  ;;  %407 = vperm.xlu2 %687, %v338_v26   ;;  %v347_v47 = vld [vmem:[#allocation3 + $0x18] sm:$0xff]  ;;  %v334_v10 = vmul.f32 0.00390625, %v302_v7 }
  0xb9   :  { %401 = vperm.xlu1 %688, %v336_v22   ;;  %380 = vperm.xlu0 %689, %v329_v23   ;;  %195 = vst.msk [vmem:[#allocation2 + $0x70] sm:$0xff] %vm35_vm0, %v178_v25  ;;  %v424_v22 = vlaneseq }
  0xbb   :  { %v842_v23 = vand.u32 127, %v424_v22 }
  0xbc   :  { %v163_v33 = vpop.xlane.xlu1 %162 }
  0xbd   :  { %v230_v34 = vpop.xlane.xlu2 %229  ;;  %v179_v36 = vadd.f32 %v163_v33, %v115_v28  ;;  %v847_v25 = vadd.s32 4294967288, %v842_v23 }
  0xbe   :  { %v139_v35 = vpop.xlane.xlu0 %138  ;;  %v266_v39 = vmax.f32 %v202_v30, %v230_v34  ;;  %v348_v63 = vld [vmem:[#allocation3 + $0x20] sm:$0xff] }
  0xbf   :  { %v171_v40 = vadd.f32 %v139_v35, %v107_v31  ;;  %196 = vst.msk [vmem:[#allocation2 + $0x78] sm:$0xff] %vm35_vm0, %v179_v36  ;;  %v356_v59 = vld [vmem:[#allocation3 + $0x60] sm:$0xff] }
  0xc0   :  { %282 = vst.msk [vmem:[#allocation3 + $0x28] sm:$0xff] %vm35_vm0, %v266_v39  ;;  %386 = vperm.xlu2 %687, %v331_v41   ;;  %v310_v6 = vld [vmem:[#allocation2 + $0x70] sm:$0xff] }
  0xc1   :  { %410 = vperm.xlu1 %688, %v339_v37   ;;  %383 = vperm.xlu0 %689, %v330_v38   ;;  %188 = vst.msk [vmem:[#allocation2 + $0x38] sm:$0xff] %vm35_vm0, %v171_v40  ;;  %v342_v9 = vmul.f32 0.00390625, %v310_v6 }
  0xc4   :  { %v233_v46 = vpop.xlane.xlu1 %232 }
  0xc5   :  { %v267_v49 = vmax.f32 %v203_v42, %v233_v46  ;;  %v257_v50 = vpop.xlane.xlu2 %256 }
  0xc6   :  { %v254_v48 = vpop.xlane.xlu0 %253  ;;  %v275_v54 = vmax.f32 %v211_v45, %v257_v50  ;;  %v311_v15 = vld [vmem:[#allocation2 + $0x78] sm:$0xff] }
  0xc7   :  { %v274_v53 = vmax.f32 %v210_v44, %v254_v48  ;;  %283 = vst.msk [vmem:[#allocation3 + $0x30] sm:$0xff] %vm35_vm0, %v267_v49  ;;  %v349_v3 = vld [vmem:[#allocation3 + $0x28] sm:$0xff]  ;;  %v343_v17 = vmul.f32 0.00390625, %v311_v15  ;;  %v576_v49 = vld [vmem:[%s951_s1 + $0x20] sm:$0xff]  ;;  %v575_v50 = vld [vmem:[%s951_s1 + $0x18] sm:$0xff] }
  0xc8   :  { %523 = vperm.xlu2 %687, %v355_v52   ;;  %291 = vst.msk [vmem:[#allocation3 + $0x70] sm:$0xff] %vm35_vm0, %v275_v54  ;;  %v303_v11 = vld [vmem:[#allocation2 + $0x38] sm:$0xff]  ;;  %v577_v48 = vld [vmem:[%s951_s1 + $0x28] sm:$0xff]  ;;  %v574_v54 = vld [vmem:[%s951_s1 + $0x10] sm:$0xff] }
  0xc9   :  { %389 = vperm.xlu1 %688, %v332_v51   ;;  %499 = vperm.xlu0 %689, %v347_v47   ;;  %290 = vst.msk [vmem:[#allocation3 + $0x68] sm:$0xff] %vm35_vm0, %v274_v53  ;;  %v335_v13 = vmul.f32 0.00390625, %v303_v11  ;;  %v578_v47 = vld [vmem:[%s951_s1 + $0x30] sm:$0xff] }
  0xca   :  { %594 = vmatpush.msra.mxu0 %v578_v47 }
  0xcc   :  { %v260_v58 = vpop.xlane.xlu1 %259  ;;  %595 = vmatpush.msra.mxu0 %v577_v48 }
  0xcd   :  { %v276_v60 = vmax.f32 %v212_v55, %v260_v58  ;;  %v573_v55 = vld [vmem:[%s951_s1 + $0x8] sm:$0xff] }
  0xce   :  { %v236_v61 = vpop.xlane.xlu0 %235  ;;  %v350_v12 = vld [vmem:[#allocation3 + $0x30] sm:$0xff]  ;;  %596 = vmatpush.msra.mxu0 %v576_v49 }
  0xcf   :  { %v268_v0 = vmax.f32 %v204_v57, %v236_v61  ;;  %292 = vst.msk [vmem:[#allocation3 + $0x78] sm:$0xff] %vm35_vm0, %v276_v60  ;;  %v358_v14 = vld [vmem:[#allocation3 + $0x70] sm:$0xff]  ;;  %v431_v60 = vadd.s32 4294967280, %v842_v23 }
  0xd0   :  { %502 = vperm.xlu2 %687, %v348_v63   ;;  %v357_v8 = vld [vmem:[#allocation3 + $0x68] sm:$0xff]  ;;  %597 = vmatpush.msra.mxu0 %v575_v50 }
  0xd1   :  { %526 = vperm.xlu1 %688, %v356_v59   ;;  %413 = vperm.xlu0 %689, %v340_v62   ;;  %284 = vst.msk [vmem:[#allocation3 + $0x38] sm:$0xff] %vm35_vm0, %v268_v0  ;;  %v435_v0 = vadd.s32 4294967272, %v842_v23 }
  0xd2   :  { %598 = vmatpush.msra.mxu0 %v574_v54 }
  0xd4   :  { %599 = vmatpush.msra.mxu0 %v573_v55 }
  0xd6   :  { %v359_v16 = vld [vmem:[#allocation3 + $0x78] sm:$0xff]  ;;  %600 = vmatpush.msra.mxu0 %v572_v56 }
  0xd8   :  { %416 = vperm.xlu2 %687, %v341_v5   ;;  %v351_v18 = vld [vmem:[#allocation3 + $0x38] sm:$0xff] }
  0xd9   :  { %505 = vperm.xlu1 %688, %v349_v3   ;;  %392 = vperm.xlu0 %689, %v333_v4  }
  0xe0   :  { %395 = vperm.xlu2 %687, %v334_v10  }
  0xe1   :  { %419 = vperm.xlu1 %688, %v342_v9   ;;  %529 = vperm.xlu0 %689, %v357_v8   ;;  %v439_v9 = vadd.s32 4294967264, %v842_v23 }
  0xe8   :  { %532 = vperm.xlu2 %687, %v358_v14  }
  0xe9   :  { %398 = vperm.xlu1 %688, %v335_v13   ;;  %508 = vperm.xlu0 %689, %v350_v12   ;;  %v443_v12 = vadd.s32 4294967256, %v842_v23  ;;  %v447_v13 = vadd.s32 4294967248, %v842_v23 }
  0xf0   :  { %511 = vperm.xlu2 %687, %v351_v18  }
  0xf1   :  { %535 = vperm.xlu1 %688, %v359_v16   ;;  %422 = vperm.xlu0 %689, %v343_v17  }
  0xf2   :  { %v491_v19 = vpop.permute.xlu2 %490 }
  0xf3   :  { %v537_v27 = vperm.slane %v491_v19, %v842_v23 }
  0xfa   :  { %v515_v20 = vpop.permute.xlu2 %514 }
  0xfb   :  { %v552_v32 = vperm.slane %v515_v20, %v842_v23 }
 0x102   :  { %v840_v21 = vpop.permute.xlu2 %377 }
 0x103   :  { %v426_v3 = vperm.slane %v840_v21, %v842_v23 }
 0x10a   :  { %v844_v24 = vpop.permute.xlu2 %404 }
 0x10b   :  { %v456_v7 = vperm.slane %v844_v24, %v847_v25 }
 0x112   :  { %v852_v30 = vpop.permute.xlu2 %407 }
 0x113   :  { %v494_v26 = vpop.permute.xlu1 %493  ;;  %v458_v11 = vperm.slane %v852_v30, %v431_v60 }
 0x114   :  { %v538_v28 = vperm.slane %v494_v26, %v847_v25 }
 0x116   :  { %v539_v29 = vsel %vm429_vm1, %v538_v28, %v537_v27  ;;  %v451_v27 = vadd.s32 4294967240, %v842_v23 }
 0x11a   :  { %v857_v37 = vpop.permute.xlu2 %386 }
 0x11b   :  { %v518_v31 = vpop.permute.xlu1 %517  ;;  %v436_v14 = vperm.slane %v857_v37, %v435_v0 }
 0x11c   :  { %v553_v33 = vperm.slane %v518_v31, %v847_v25 }
 0x11e   :  { %v554_v34 = vsel %vm429_vm1, %v553_v33, %v552_v32 }
 0x122   :  { %v524_v40 = vpop.permute.xlu2 %523 }
 0x123   :  { %v521_v35 = vpop.permute.xlu0 %520  ;;  %v497_v36 = vpop.permute.xlu1 %496  ;;  %v557_v4 = vperm.slane %v524_v40, %v435_v0 }
 0x124   :  { %v555_v63 = vperm.slane %v521_v35, %v431_v60  ;;  %v540_v1 = vperm.slane %v497_v36, %v431_v60 }
 0x126   :  { %v556_v8 = vsel %vm433_vm2, %v555_v63, %v554_v34  ;;  %v541_v15 = vsel %vm433_vm2, %v540_v1, %v539_v29 }
 0x127   :  { %v558_v18 = vsel %vm437_vm3, %v557_v4, %v556_v8 }
 0x12a   :  { %v864_v44 = vpop.permute.xlu2 %502 }
 0x12b   :  { %v402_v38 = vpop.permute.xlu1 %401  ;;  %v381_v39 = vpop.permute.xlu0 %380  ;;  %v544_v28 = vperm.slane %v864_v44, %v439_v9 }
 0x12c   :  { %v455_v2 = vperm.slane %v402_v38, %v842_v23  ;;  %v428_v5 = vperm.slane %v381_v39, %v847_v25 }
 0x12e   :  { %v457_v16 = vsel %vm429_vm1, %v456_v7, %v455_v2  ;;  %v430_v19 = vsel %vm429_vm1, %v428_v5, %v426_v3  ;;  %v580_v3 = vld [vmem:[%s952_s2] sm:$0xf]  ;;  %s752_s2 = smov [#allocation7]   ;;  %vm657_vm1 = vcmask 517120  }
 0x12f   :  { %v459_v29 = vsel %vm433_vm2, %v458_v11, %v457_v16  ;;  %677 = vmatpush.msk.msra.mxu1 %vm610_vm12, %v580_v3  ;;  %s664_s8 = sshll.u32 %s752_s2, 4  ;;  %s665_s8 = int_to_ptr.vmem [resolvable:$true] %s664_s8 }
 0x132   :  { %v880_v51 = vpop.permute.xlu2 %416 }
 0x133   :  { %v859_v41 = vpop.permute.xlu1 %410  ;;  %v384_v42 = vpop.permute.xlu0 %383  ;;  %v464_v36 = vperm.slane %v880_v51, %v443_v12 }
 0x134   :  { %v432_v10 = vperm.slane %v384_v42, %v431_v60  ;;  %v460_v20 = vperm.slane %v859_v41, %v435_v0 }
 0x136   :  { %v434_v24 = vsel %vm433_vm2, %v432_v10, %v430_v19  ;;  %v461_v35 = vsel %vm437_vm3, %v460_v20, %v459_v29 }
 0x137   :  { %v438_v37 = vsel %vm437_vm3, %v436_v14, %v434_v24 }
 0x13a   :  { %v893_v59 = vpop.permute.xlu2 %395 }
 0x13b   :  { %v866_v45 = vpop.permute.xlu1 %389  ;;  %v500_v46 = vpop.permute.xlu0 %499  ;;  %v448_v39 = vperm.slane %v893_v59, %v447_v13 }
 0x13c   :  { %v542_v17 = vperm.slane %v500_v46, %v435_v0  ;;  %v440_v25 = vperm.slane %v866_v45, %v439_v9 }
 0x13e   :  { %v543_v31 = vsel %vm437_vm3, %v542_v17, %v541_v15  ;;  %v442_v23 = vsel %vm441_vm4, %v440_v25, %v438_v37 }
 0x13f   :  { %v545_v43 = vsel %vm441_vm4, %v544_v28, %v543_v31 }
 0x142   :  { %v533_v6 = vpop.permute.xlu2 %532 }
 0x143   :  { %v882_v52 = vpop.permute.xlu1 %526  ;;  %v414_v53 = vpop.permute.xlu0 %413  ;;  %v563_v42 = vperm.slane %v533_v6, %v447_v13 }
 0x144   :  { %v462_v26 = vperm.slane %v414_v53, %v439_v9  ;;  %v559_v30 = vperm.slane %v882_v52, %v439_v9 }
 0x146   :  { %v463_v40 = vsel %vm441_vm4, %v462_v26, %v461_v35  ;;  %v560_v41 = vsel %vm441_vm4, %v559_v30, %v558_v18 }
 0x147   :  { %v465_v50 = vsel %vm445_vm5, %v464_v36, %v463_v40 }
 0x14a   :  { %v512_v44 = vpop.permute.xlu2 %511 }
 0x14b   :  { %v506_v57 = vpop.permute.xlu1 %505  ;;  %v393_v58 = vpop.permute.xlu0 %392  ;;  %v550_v54 = vperm.slane %v512_v44, %v451_v27 }
 0x14c   :  { %v546_v32 = vperm.slane %v506_v57, %v443_v12  ;;  %v444_v33 = vperm.slane %v393_v58, %v443_v12 }
 0x14e   :  { %v547_v46 = vsel %vm445_vm5, %v546_v32, %v545_v43  ;;  %v446_v47 = vsel %vm445_vm5, %v444_v33, %v442_v23 }
 0x14f   :  { %v450_v58 = vsel %vm449_vm6, %v448_v39, %v446_v47 }
 0x153   :  { %v896_v61 = vpop.permute.xlu1 %419  ;;  %v530_v62 = vpop.permute.xlu0 %529 }
 0x154   :  { %v561_v34 = vperm.slane %v530_v62, %v443_v12  ;;  %v466_v45 = vperm.slane %v896_v61, %v447_v13 }
 0x156   :  { %v562_v48 = vsel %vm445_vm5, %v561_v34, %v560_v41  ;;  %v467_v57 = vsel %vm449_vm6, %v466_v45, %v465_v50 }
 0x157   :  { %v564_v59 = vsel %vm449_vm6, %v563_v42, %v562_v48 }
 0x15b   :  { %v399_v21 = vpop.permute.xlu1 %398  ;;  %v509_v22 = vpop.permute.xlu0 %508 }
 0x15c   :  { %v548_v38 = vperm.slane %v509_v22, %v447_v13  ;;  %v452_v49 = vperm.slane %v399_v21, %v451_v27 }
 0x15e   :  { %v549_v51 = vsel %vm449_vm6, %v548_v38, %v547_v46  ;;  %v454_v60 = vsel %vm453_vm7, %v452_v49, %v450_v58 }
 0x15f   :  { %v551_v63 = vsel %vm453_vm7, %v550_v54, %v549_v51 }
 0x163   :  { %v536_v52 = vpop.permute.xlu1 %535  ;;  %v423_v53 = vpop.permute.xlu0 %422 }
 0x164   :  { %v565_v55 = vperm.slane %v536_v52, %v451_v27  ;;  %v468_v56 = vperm.slane %v423_v53, %v451_v27 }
 0x166   :  { %v566_v61 = vsel %vm453_vm7, %v565_v55, %v564_v59  ;;  %v469_v62 = vsel %vm453_vm7, %v468_v56, %v467_v57 }
 0x167   :  { %v471_v0 = vsel %vm470_vm8, %v469_v62, %v454_v60  ;;  %v568_v1 = vsel %vm567_vm9, %v566_v61, %v551_v63 }
 0x168   :  { %v571_v2 = vsel %vm570_vm10, %v471_v0, %v568_v1 }
 0x169   :  { %676 = vmatmul.msk.f32.vlgmr.msra.gmra.mxu0 %vm581_vm11, %v571_v2 }
 0x1e6   :  { %v602_v4 = vpop.f32.mrf.mxu0 }
 0x1e7   :  { %v605_v5 = vmax.f32 %v602_v4, 0.0 }
 0x1e9   :  { %678 = vmatmul.msk.f32.vlgmr.msra.gmra.mxu1 %vm606_vm13, %v605_v5 }
 0x266   :  { %v631_v6 = vpop.f32.mrf.mxu1 }
 0x267   :  { %v635_v7 = vrot.slane %v631_v6, 2 }
 0x269   :  { %v637_v8 = vadd.f32 %v635_v7, %v631_v6 }
 0x26b   :  { %v679_v9 = vmul.f32 -1.442695, %v637_v8 }
 0x26d   :  { %690 = vpow2.f32 %v679_v9 }
 0x273   :  { %v691_v10 = vpop.eup %690 }
 0x274   :  { %v641_v11 = vadd.f32 1.0, %v691_v10 }
 0x276   :  { %692 = vrcp.f32 %v641_v11  ;;  %v653_v15 = vand.u32 2147483648, %v641_v11  ;;  %v651_v17 = vand.u32 2147483647, %v641_v11  ;;  %vm647_vm15 = vweird.f32 %v641_v11 }
 0x278   :  { %v654_v19 = vor.u32 1.1754944e-38, %v653_v15  ;;  %vm652_vm2 = vcmp.eq.f32.partialorder %v651_v17, 8.507059e+37 }
 0x27c   :  { %v693_v12 = vpop.eup %692 }
 0x27d   :  { %v643_v13 = vmul.f32 %v693_v12, %v641_v11  ;;  %vm648_vm14 = vweird.f32 %v693_v12 }
 0x27e   :  { %vm649_vm0 = vmor %vm647_vm15, %vm648_vm14 }
 0x27f   :  { %v644_v14 = vsub.f32 1.0, %v643_v13 }
 0x281   :  { %v645_v16 = vmul.f32 %v693_v12, %v644_v14 }
 0x283   :  { %v646_v18 = vadd.f32 %v693_v12, %v645_v16 }
 0x285   :  { %v650_v20 = vsel %vm649_vm0, %v693_v12, %v646_v18 }
 0x286   :  { %v655_v21 = vsel %vm652_vm2, %v654_v19, %v650_v20 }
 0x287   :  { %658 = vst.msk [vmem:[#allocation7] sm:$0x3] %vm657_vm1, %v655_v21 }
 0x288   :  { %669 = dma.vmem_to_hbm [thread:$0]  %s665_s8, 32, %s667_s11, [#allocation6]  }
 0x289   :  { %744 = dma.done.wait [#allocation6], 32  }
 0x28a   :  { %745 = vsyncadd [#allocation6], 4294967264 }
 0x28b   :  { %674 = vsyncpa [#allocation5], 1 }
 0x28c   :  { %675 = vsyncpa [#allocation6], 1 }

</bundles_post_ra>
